<compile_context>
chip_gen: v7x
topology: tpu7x:2x2x1
jax: 0.10.0
libtpu: 0.0.40
codegen_flags: <defaults>
</compile_context>

<pallas_src>
import functools

import jax
import jax.numpy as jnp
from jax.experimental import pallas as pl
from jax.experimental.pallas import tpu as pltpu


def _round_up(x, m):
    return ((x + m - 1) // m) * m


# ----------------------------------------------------------------------------
# Kernel
# ----------------------------------------------------------------------------
def _bahdanau_kernel(mem_ref, pq_ref, chars_ref, v_ref, out_ref, *, t_len):
    # mem_ref  : (bB, A, Tp)  encoder memory tile, TIME on the lane axis
    # pq_ref   : (bB, A)      processed query tile (query @ Wq^T), float32
    # chars_ref: (bB, Tp)     int32 char ids (0 == padding), Tp-padded with 0
    # v_ref    : (A, 1)       v weights as a column; constant index_map -> resident
    # out_ref  : (bB, Tp)     softmax over time (padded columns get exactly 0)
    mem = mem_ref[...].astype(jnp.float32)                   # (bB, A, Tp)
    pq = pq_ref[...].astype(jnp.float32)                     # (bB, A)
    v = v_ref[...].astype(jnp.float32)                       # (A, 1)

    # energies = v . tanh(pq + mem): VPU add + EUP tanh + VPU mul, then an
    # XLU sublane reduction over A.  No width-1 MXU matmul, no reshape.
    h = jnp.tanh(pq[:, :, None] + mem)                       # (bB, A, Tp)
    e = jnp.sum(h * v[None, :, :], axis=1)                   # (bB, Tp)

    # u = u * (chars != 0).float()   (faithful to the PyTorch module)
    u = e * (chars_ref[...] != 0).astype(jnp.float32)

    # Additive mask for the lane-padding columns (t >= t_len) so padded time
    # steps receive exactly zero softmax weight.
    tp = u.shape[-1]
    if tp != t_len:
        col = jax.lax.broadcasted_iota(jnp.int32, (1, tp), 1)
        u = jnp.where(col < t_len, u, -1e30)

    # softmax over time (nn.Softmax(dim=1)), all in f32.
    m = jnp.max(u, axis=-1, keepdims=True)
    ex = jnp.exp(u - m)
    out_ref[...] = (ex / jnp.sum(ex, axis=-1, keepdims=True)).astype(out_ref.dtype)


# ----------------------------------------------------------------------------
# Tiling helpers
# ----------------------------------------------------------------------------
def _vmem_limit_bytes():
    """Generation-aware scoped-VMEM limit (leaves headroom for Mosaic scratch)."""
    cap = 64 * 1024 * 1024                      # conservative default (v7x per-core)
    try:
        cap = int(getattr(pltpu.get_tpu_info(), "vmem_capacity_bytes", cap))
    except Exception:
        pass
    # ~96 MiB on 128 MiB parts (v5e/v6e), ~48 MiB on 64 MiB parts (v7x).
    return int(min(cap * 3 // 4, 112 * 1024 * 1024))


def _pick_batch_block(B, A, Tp, stream_itemsize, vmem_budget):
    """Largest batch tile whose TRUE footprint fits the budget: double-buffered
    streamed tile + ~3 full f32 temporaries (upcast / tanh / v-product) +
    double-buffered chars & output rows."""
    per_row = (2 * A * Tp * stream_itemsize     # streamed mem tile (x2 buffers)
               + 3 * A * Tp * 4                 # f32 kernel temporaries
               + 2 * 2 * Tp * 4                 # chars + out rows (x2 buffers each)
               + 2 * A * 4)                     # pq row (x2 buffers)
    max_bb = max(1, vmem_budget // per_row)
    if B <= max_bb:
        # Whole batch fits in one grid step.  If the batch is big enough,
        # split into >=2 multiple-of-8 tiles so DMA/compute overlap and the
        # v7x megacore split both have at least two steps to work with.
        if B >= 16:
            half = _round_up((B + 1) // 2, 8)
            if half < B:
                return half
        return B
    return int(min(max(8, (max_bb // 8) * 8), B))


# ----------------------------------------------------------------------------
# Wrappers
# ----------------------------------------------------------------------------
def prepare_encoder_memory(encoder_seq_proj, stream_dtype=None):
    """One-time (per utterance) relayout of the encoder projection.

    (B, T, A) -> (B, A, Tp) with Tp = round_up(T, 128): time becomes the lane
    axis (dense vregs, lane-dense output stores).  In Tacotron decoding this
    tensor is reused every decoder step, so call this once outside the loop
    (optionally with stream_dtype=jnp.bfloat16 to halve HBM traffic -- the
    kernel upcasts to f32 internally; particularly valuable on v5e).
    """
    B, T, A = encoder_seq_proj.shape
    tp = _round_up(T, 128)
    mem = jnp.swapaxes(encoder_seq_proj, 1, 2)               # (B, A, T)
    if tp != T:
        mem = jnp.pad(mem, ((0, 0), (0, 0), (0, tp - T)))
    if stream_dtype is not None:
        mem = mem.astype(stream_dtype)
    return mem


def bahdanau_attention(mem_lt, query, chars, wq_t, v_t, batch_block=None):
    """Pallas forward pass.

    mem_lt : (B, A, Tp)  output of prepare_encoder_memory()
    query  : (B, Dq) or (B, 1, Dq)
    chars  : (B, T) int  (0 == padding), T <= Tp
    wq_t   : (Dq, A)  query_layer weight, transposed
    v_t    : (A, 1)   v weight, transposed
    returns: (B, T) float32 attention weights (softmax over time)
    """
    B, A, Tp = mem_lt.shape
    if query.ndim == 3:
        query = query.reshape(B, -1)
    T = chars.shape[1]
    assert T <= Tp, "chars length exceeds the prepared memory's time axis"

    # Hoisted tiny matmul: processed_query = query @ Wq^T -> (B, A), f32.
    pq = jnp.dot(query.astype(jnp.float32), wq_t.astype(jnp.float32),
                 preferred_element_type=jnp.float32)
    v_col = v_t.astype(jnp.float32).reshape(A, 1)
    chars_p = chars.astype(jnp.int32)
    if Tp != T:
        chars_p = jnp.pad(chars_p, ((0, 0), (0, Tp - T)))    # zeros -> masked cols

    stream_itemsize = jnp.dtype(mem_lt.dtype).itemsize
    vmem_limit = _vmem_limit_bytes()
    if batch_block is None:
        bB = _pick_batch_block(B, A, Tp, stream_itemsize, int(vmem_limit * 0.85))
    else:
        bB = max(1, min(int(batch_block), B))
    if bB != B and bB % 8 != 0:                 # (8,128) sublane rule on 2-D blocks
        bB = min(B, _round_up(bB, 8))
    num_blocks = pl.cdiv(B, bB)                 # ragged final block handled by Pallas

    cost = pl.CostEstimate(
        flops=B * (3 * A * Tp + 5 * Tp),
        transcendentals=B * (A * Tp + Tp),
        bytes_accessed=(B * A * Tp * stream_itemsize          # memory stream
                        + B * (A + 2 * Tp) * 4 + A * 4),      # pq + chars + out + v
    )

    out = pl.pallas_call(
        functools.partial(_bahdanau_kernel, t_len=T),
        out_shape=jax.ShapeDtypeStruct((B, Tp), jnp.float32),
        grid=(num_blocks,),
        in_specs=[
            pl.BlockSpec((bB, A, Tp), lambda i: (i, 0, 0)),   # streamed memory tile
            pl.BlockSpec((bB, A), lambda i: (i, 0)),          # processed query tile
            pl.BlockSpec((bB, Tp), lambda i: (i, 0)),         # chars (mask) tile
            pl.BlockSpec((A, 1), lambda i: (0, 0)),           # v column: fetched once
        ],
        out_specs=pl.BlockSpec((bB, Tp), lambda i: (i, 0)),
        compiler_params=pltpu.CompilerParams(
            dimension_semantics=("parallel",),                # megacore split on v7x
            vmem_limit_bytes=vmem_limit,
        ),
        cost_estimate=cost,
    )(mem_lt, pq, chars_p, v_col)

    return out if Tp == T else out[:, :T]


def bahdanau_attention_btA(encoder_seq_proj, query, chars, wq_t, v_t, batch_block=None):
    """Drop-in wrapper on the PyTorch (B, T, A) layout.  In a real decoder
    loop, hoist prepare_encoder_memory() out of the loop instead."""
    mem_lt = prepare_encoder_memory(encoder_seq_proj)
    return bahdanau_attention(mem_lt, query, chars, wq_t, v_t, batch_block=batch_block)


def bahdanau_attention_ref(encoder_seq_proj, query, chars, wq_t, v_t):
    """Plain-JAX reference mirroring the PyTorch forward."""
    if query.ndim == 2:
        query = query[:, None, :]
    pq = query.astype(jnp.float32) @ wq_t.astype(jnp.float32)            # (B, 1, A)
    e = (jnp.tanh(pq + encoder_seq_proj.astype(jnp.float32))
         @ v_t.astype(jnp.float32))[..., 0]                              # (B, T)
    u = e * (chars != 0).astype(jnp.float32)
    return jax.nn.softmax(u, axis=1)


if __name__ == "__main__":
    key = jax.random.PRNGKey(0)
    query_dim, attn_dim = 48, 32
    k_mem, k_q, k_wq, k_v, k_chars, k2a, k2b, k2c = jax.random.split(key, 8)

    wq_t = (jax.random.normal(k_wq, (query_dim, attn_dim), dtype=jnp.float32)
            / jnp.sqrt(query_dim))
    v_t = (jax.random.normal(k_v, (attn_dim, 1), dtype=jnp.float32)
           / jnp.sqrt(attn_dim))

    # ---- test 1: small module-consistent shapes (single grid step, T 8 -> Tp 128) ----
    B, T = 2, 8
    enc = jax.random.normal(k_mem, (B, T, attn_dim), dtype=jnp.float32)
    q = jax.random.normal(k_q, (B, query_dim), dtype=jnp.float32)
    chars = jax.random.randint(k_chars, (B, T), minval=0, maxval=5, dtype=jnp.int32)
    chars = chars.at[:, -2:].set(0)

    mem_lt = prepare_encoder_memory(enc)          # hoisted once per utterance
    out = jax.block_until_ready(bahdanau_attention(mem_lt, q, chars, wq_t, v_t))
    ref = bahdanau_attention_ref(enc, q, chars, wq_t, v_t)
    assert out.shape == (B, T)
    assert jnp.allclose(out, ref, atol=1e-5, rtol=1e-5), "mismatch vs reference (test 1)"

    # ---- test 2: multi-step grid with ragged final batch block (T 200 -> Tp 256) ----
    B2, T2 = 12, 200
    enc2 = jax.random.normal(k2a, (B2, T2, attn_dim), dtype=jnp.float32)
    q2 = jax.random.normal(k2b, (B2, 1, query_dim), dtype=jnp.float32)
    chars2 = jax.random.randint(k2c, (B2, T2), minval=0, maxval=5, dtype=jnp.int32)
    chars2 = chars2.at[:, -17:].set(0)

    mem2 = prepare_encoder_memory(enc2)
    out2 = jax.block_until_ready(
        bahdanau_attention(mem2, q2, chars2, wq_t, v_t, batch_block=8))   # grid=(2,), ragged tail
    ref2 = bahdanau_attention_ref(enc2, q2, chars2, wq_t, v_t)
    assert out2.shape == (B2, T2)
    assert jnp.allclose(out2, ref2, atol=1e-5, rtol=1e-5), "mismatch vs reference (test 2)"

    print("KERNEL_OK")
</pallas_src>

<mosaic_0001>
module attributes {stable_mosaic.version = 11 : i64} {
  func.func @_bahdanau_kernel(%arg0: i32, %arg1: memref<2x32x128xf32, #tpu.memory_space<vmem>>, %arg2: memref<2x32xf32, #tpu.memory_space<vmem>>, %arg3: memref<2x128xi32, #tpu.memory_space<vmem>>, %arg4: memref<32x1xf32, #tpu.memory_space<vmem>>, %arg5: memref<2x128xf32, #tpu.memory_space<vmem>>) attributes {dimension_semantics = [#tpu.dimension_semantics<parallel>], iteration_bounds = array<i64: 1>, scalar_prefetch = 0 : i64, scratch_operands = 0 : i64, tpu.core_type = #tpu.core_type<tc>, window_params = [{transform_indices = @transform_0, window_bounds = array<i64: 2, 32, 128>}, {transform_indices = @transform_1, window_bounds = array<i64: 2, 32>}, {transform_indices = @transform_2, window_bounds = array<i64: 2, 128>}, {pipeline_mode = #tpu.pipeline_mode<synchronous>, transform_indices = @transform_3, window_bounds = array<i64: 32, 1>}, {transform_indices = @transform_4, window_bounds = array<i64: 2, 128>}]} {
    %c0 = arith.constant 0 : index
    %c0_0 = arith.constant 0 : index
    %c0_1 = arith.constant 0 : index
    %0 = vector.load %arg1[%c0, %c0_0, %c0_1] : memref<2x32x128xf32, #tpu.memory_space<vmem>>, vector<2x32x128xf32>
    %c0_2 = arith.constant 0 : index
    %c0_3 = arith.constant 0 : index
    %1 = vector.load %arg2[%c0_2, %c0_3] : memref<2x32xf32, #tpu.memory_space<vmem>>, vector<2x32xf32>
    %c0_4 = arith.constant 0 : index
    %c0_5 = arith.constant 0 : index
    %2 = vector.load %arg4[%c0_4, %c0_5] : memref<32x1xf32, #tpu.memory_space<vmem>>, vector<32x1xf32>
    %3 = vector.shape_cast %1 : vector<2x32xf32> to vector<2x32x1xf32>
    %4 = vector.broadcast %3 : vector<2x32x1xf32> to vector<2x32x128xf32>
    %5 = arith.addf %4, %0 : vector<2x32x128xf32>
    %6 = math.tanh %5 : vector<2x32x128xf32>
    %7 = vector.shape_cast %2 : vector<32x1xf32> to vector<1x32x1xf32>
    %8 = vector.broadcast %7 : vector<1x32x1xf32> to vector<2x32x128xf32>
    %9 = arith.mulf %6, %8 : vector<2x32x128xf32>
    %cst = arith.constant dense<0.000000e+00> : vector<2x128xf32>
    %10 = vector.multi_reduction <add>, %9, %cst [1] : vector<2x32x128xf32> to vector<2x128xf32>
    %c0_6 = arith.constant 0 : index
    %c0_7 = arith.constant 0 : index
    %11 = vector.load %arg3[%c0_6, %c0_7] : memref<2x128xi32, #tpu.memory_space<vmem>>, vector<2x128xi32>
    %c0_i32 = arith.constant 0 : i32
    %12 = vector.broadcast %c0_i32 : i32 to vector<2x128xi32>
    %13 = arith.cmpi ne, %11, %12 : vector<2x128xi32>
    %14 = arith.extui %13 : vector<2x128xi1> to vector<2x128xi32>
    %15 = arith.sitofp %14 : vector<2x128xi32> to vector<2x128xf32>
    %16 = arith.mulf %10, %15 : vector<2x128xf32>
    %17 = tpu.iota {dimensions = array<i32: 1>} : vector<1x128xi32>
    %c8_i32 = arith.constant 8 : i32
    %18 = vector.broadcast %c8_i32 : i32 to vector<1x128xi32>
    %19 = arith.cmpi slt, %17, %18 : vector<1x128xi32>
    %cst_8 = arith.constant -1.000000e+30 : f32
    %20 = vector.shape_cast %19 : vector<1x128xi1> to vector<1x128xi1>
    %21 = vector.broadcast %20 : vector<1x128xi1> to vector<2x128xi1>
    %22 = vector.broadcast %cst_8 : f32 to vector<2x128xf32>
    %23 = arith.select %21, %16, %22 : vector<2x128xi1>, vector<2x128xf32>
    %cst_9 = arith.constant dense<0xFF800000> : vector<2xf32>
    %24 = vector.multi_reduction <maximumf>, %23, %cst_9 [1] : vector<2x128xf32> to vector<2xf32>
    %25 = vector.shape_cast %24 : vector<2xf32> to vector<2x1xf32>
    %26 = vector.broadcast %25 : vector<2x1xf32> to vector<2x128xf32>
    %27 = arith.subf %23, %26 : vector<2x128xf32>
    %28 = math.exp %27 : vector<2x128xf32>
    %cst_10 = arith.constant dense<0.000000e+00> : vector<2xf32>
    %29 = vector.multi_reduction <add>, %28, %cst_10 [1] : vector<2x128xf32> to vector<2xf32>
    %30 = vector.shape_cast %29 : vector<2xf32> to vector<2x1xf32>
    %31 = vector.broadcast %30 : vector<2x1xf32> to vector<2x128xf32>
    %32 = arith.divf %28, %31 : vector<2x128xf32>
    %c0_11 = arith.constant 0 : index
    %c0_12 = arith.constant 0 : index
    %33 = vector.load %arg5[%c0_11, %c0_12] : memref<2x128xf32, #tpu.memory_space<vmem>>, vector<2x128xf32>
    tpu.vector_store %arg5[%c0_11, %c0_12], %32 {strides = array<i32>} : memref<2x128xf32, #tpu.memory_space<vmem>>, vector<2x128xf32>,
    return
  }
  func.func @transform_0(%arg0: i32) -> (i32, i32, i32) {
    %c0_i32 = arith.constant 0 : i32
    %c0_i32_0 = arith.constant 0 : i32
    %c0_i32_1 = arith.constant 0 : i32
    return %arg0, %c0_i32, %c0_i32_0 : i32, i32, i32
  }
  func.func @transform_1(%arg0: i32) -> (i32, i32) {
    %c0_i32 = arith.constant 0 : i32
    %c0_i32_0 = arith.constant 0 : i32
    return %arg0, %c0_i32 : i32, i32
  }
  func.func @transform_2(%arg0: i32) -> (i32, i32) {
    %c0_i32 = arith.constant 0 : i32
    %c0_i32_0 = arith.constant 0 : i32
    return %arg0, %c0_i32 : i32, i32
  }
  func.func @transform_3(%arg0: i32) -> (i32, i32) {
    %c0_i32 = arith.constant 0 : i32
    %c0_i32_0 = arith.constant 0 : i32
    %c0_i32_1 = arith.constant 0 : i32
    return %c0_i32, %c0_i32_0 : i32, i32
  }
  func.func @transform_4(%arg0: i32) -> (i32, i32) {
    %c0_i32 = arith.constant 0 : i32
    %c0_i32_0 = arith.constant 0 : i32
    return %arg0, %c0_i32 : i32, i32
  }
}

</mosaic_0001>

<bundles_post_ra>
// kernel: tpu_custom_call.1
= control target key start
LH: loop header
LB: loop body
LE: loop exit
PB: predicated region body
PF: predicated region fallthrough
CT: control target
= control target key end

     0   :  { %9 = vsyncpa [#allocation3], 0  ;;  %s347_s0 = inlined_call_operand.hbm [shape: f32[2,32,128], index: 0, kind: input, shape index: {}]   ;;  %s348_s1 = inlined_call_operand.vmem [shape: f32[2,32], index: 1, kind: input, shape index: {}]   ;;  %s349_s2 = inlined_call_operand.vmem [shape: s32[2,128], index: 2, kind: input, shape index: {}]   ;;  %s350_s3 = inlined_call_operand.vmem [shape: f32[32,1], index: 3, kind: input, shape index: {}]   ;;  %s351_s4 = inlined_call_operand.hbm [shape: f32[2,128], index: 4, kind: output, shape index: {}]  }
   0x1   :  { %10 = vsyncpa [#allocation4], 0  ;;  %s272_s15 = smov [#allocation2]   ;;  %s224_s19 = scalar_lea.hbm %s347_s0, 1024 }
   0x2   :  { %s16_s16 = sshll.u32 %s272_s15, 4  ;;  %p225_p0 = scmp.ne.s32.totalorder %s347_s0, %s224_s19  ;;  %s17_s16 = int_to_ptr.vmem [resolvable:$true] %s16_s16 }
   0x3   :  { %p228_p1 = scmp.lt.u32.totalorder %s224_s19, %s347_s0 }
   0x5   :  { %p230_p2 = pnand %p228_p1, %p225_p0 }
   0x7   :  { %233 = shalt.err (!%p230_p2)
}
   0x8   :  { %s234_s24 = scalar_lea.vmem %s17_s16, 1024  ;;  %p239_p4 = scmp.lt.s32.totalorder %s17_s16, %s17_s16 }
   0x9   :  { %p235_p3 = scmp.ne.s32.totalorder %s17_s16, %s234_s24  ;;  %p240_p5 = scmp.lt.s32.totalorder %s234_s24, %s234_s24 }
   0xb   :  { %p241_p6 = por %p240_p5, %p239_p4 }
   0xd   :  { %p242_p7 = pnand %p241_p6, %p235_p3 }
   0xf   :  { %245 = shalt.err (!%p242_p7)
}
  0x10   :  { %s273_s25 = smov 128   ;;  %s274_s26 = smov 8  }
  0x11   :  { %22 = dma.hbm_to_vmem [thread:$0]  %s347_s0, 1024, %s17_s16, [#allocation3], %s273_s25, %s273_s25, %s274_s26  }
  0x12   :  { %268 = dma.done.wait [#allocation3], 1024  }
  0x13   :  { %269 = vsyncadd [#allocation3], 4294966272  ;;  %v45_v0 = vlaneseq  ;;  %v275_v1 = vmov 0   ;;  %v40_v5 = vld [vmem:[%s348_s1] sm:$0x3]  ;;  %v42_v9 = vld [vmem:[%s350_s3 + $0x8] sm:$0xff] }
  0x14   :  { %203 = vset.pattern.permute.xlu1 %v275_v1  ;;  %202 = vset.pattern.permute.xlu0 %v275_v1  ;;  %v41_v8 = vld [vmem:[%s350_s3] sm:$0xff]  ;;  %v44_v10 = vld [vmem:[%s350_s3 + $0x18] sm:$0xff]  ;;  %v43_v11 = vld [vmem:[%s350_s3 + $0x10] sm:$0xff]  ;;  %vm163_vm1 = vcmask 1041409   ;;  %vm167_vm3 = vcmask 1041408  }
  0x15   :  { %v46_v2 = vshrl.u32 %v45_v0, 7  ;;  %v32_v16 = vld [vmem:[#allocation2] sm:$0xff]  ;;  %v33_v18 = vld [vmem:[#allocation2 + $0x8] sm:$0xff]  ;;  %v34_v26 = vld [vmem:[#allocation2 + $0x10] sm:$0xff] }
  0x16   :  { %v36_v17 = vld [vmem:[#allocation2 + $0x20] sm:$0xff]  ;;  %v37_v21 = vld [vmem:[#allocation2 + $0x28] sm:$0xff]  ;;  %v38_v27 = vld [vmem:[#allocation2 + $0x30] sm:$0xff] }
  0x17   :  { %v66_v3 = vsub.s32 1, %v46_v2  ;;  %v47_v4 = vsub.s32 0, %v46_v2  ;;  %v35_v29 = vld [vmem:[#allocation2 + $0x18] sm:$0xff]  ;;  %v145_v62 = vld [vmem:[%s349_s2] sm:$0x3]  ;;  %s277_s2 = smov [#allocation5]  }
  0x18   :  { %v39_v32 = vld [vmem:[#allocation2 + $0x38] sm:$0xff]  ;;  %vm146_vm0 = vcmp.ne.s32.totalorder %v145_v62, 0  ;;  %s186_s12 = sshll.u32 %s277_s2, 4  ;;  %s187_s12 = int_to_ptr.vmem [resolvable:$true] %s186_s12 }
  0x19   :  { %v67_v6 = vrot.slane %v40_v5, %v66_v3  ;;  %v48_v7 = vrot.slane %v40_v5, %v47_v4  ;;  %s246_s13 = scalar_lea.vmem %s187_s12, 32  ;;  %p251_p9 = scmp.lt.s32.totalorder %s187_s12, %s187_s12 }
  0x1a   :  { %p247_p8 = scmp.ne.s32.totalorder %s187_s12, %s246_s13  ;;  %p252_p10 = scmp.lt.s32.totalorder %s246_s13, %s246_s13 }
  0x1b   :  { %69 = vbcast.lane.b32.xlu0 %v67_v6, 256  ;;  %50 = vbcast.lane.b32.xlu1 %v48_v7, 256 }
  0x1c   :  { %p253_p11 = por %p252_p10, %p251_p9 }
  0x1e   :  { %p254_p12 = pnand %p253_p11, %p247_p8 }
  0x1f   :  { %73 = vbcast.lane.b32.xlu0 %v67_v6, 264  ;;  %54 = vbcast.lane.b32.xlu1 %v48_v7, 264 }
  0x23   :  { %77 = vbcast.lane.b32.xlu0 %v67_v6, 272  ;;  %58 = vbcast.lane.b32.xlu1 %v48_v7, 272 }
  0x27   :  { %81 = vbcast.lane.b32.xlu0 %v67_v6, 280  ;;  %62 = vbcast.lane.b32.xlu1 %v48_v7, 280  ;;  %v276_v6 = vmov 0.0  }
  0x28   :  { %v195_v7 = vsel %vm146_vm0, 1.0, %v276_v6 }
  0x2b   :  { %101 = vperm.xlu0 %202, %v41_v8   ;;  %106 = vperm.xlu1 %203, %v42_v9  }
  0x2f   :  { %116 = vperm.xlu0 %202, %v44_v10   ;;  %111 = vperm.xlu1 %203, %v43_v11  }
  0x8d   :  { %v51_v12 = vpop.permute.xlu1 %50  ;;  %v70_v13 = vpop.permute.xlu0 %69 }
  0x8e   :  { %v83_v20 = vadd.f32 %v51_v12, %v32_v16  ;;  %v87_v23 = vadd.f32 %v70_v13, %v36_v17  ;;  %v150_v12 = vrot.slane %v195_v7, 1 }
  0x90   :  { %204 = vtanh.f32 %v83_v20 }
  0x91   :  { %v55_v14 = vpop.permute.xlu1 %54  ;;  %v74_v15 = vpop.permute.xlu0 %73  ;;  %206 = vtanh.f32 %v87_v23 }
  0x92   :  { %v84_v24 = vadd.f32 %v55_v14, %v33_v18  ;;  %v88_v25 = vadd.f32 %v74_v15, %v37_v21  ;;  %v156_v15 = vand.u32 127, %v45_v0 }
  0x94   :  { %208 = vtanh.f32 %v84_v24  ;;  %vm157_vm2 = vcmp.lt.s32.totalorder %v156_v15, 8 }
  0x95   :  { %v59_v19 = vpop.permute.xlu1 %58  ;;  %v78_v22 = vpop.permute.xlu0 %77  ;;  %210 = vtanh.f32 %v88_v25 }
  0x96   :  { %v85_v30 = vadd.f32 %v59_v19, %v34_v26  ;;  %v89_v33 = vadd.f32 %v78_v22, %v38_v27 }
  0x98   :  { %212 = vtanh.f32 %v85_v30 }
  0x99   :  { %v63_v28 = vpop.permute.xlu1 %62  ;;  %v82_v31 = vpop.permute.xlu0 %81  ;;  %214 = vtanh.f32 %v89_v33 }
  0x9a   :  { %v86_v34 = vadd.f32 %v63_v28, %v35_v29  ;;  %v90_v35 = vadd.f32 %v82_v31, %v39_v32  ;;  %v205_v36 = vpop.eup %204 }
  0x9b   :  { %v207_v37 = vpop.eup %206 }
  0x9c   :  { %216 = vtanh.f32 %v86_v34 }
  0x9d   :  { %218 = vtanh.f32 %v90_v35 }
  0x9e   :  { %v209_v38 = vpop.eup %208 }
  0x9f   :  { %v211_v39 = vpop.eup %210 }
  0xa2   :  { %v213_v46 = vpop.eup %212 }
  0xa3   :  { %v215_v47 = vpop.eup %214 }
  0xa6   :  { %v217_v50 = vpop.eup %216 }
  0xa7   :  { %v219_v55 = vpop.eup %218 }
  0xaa   :  { %v102_v40 = vpop.permute.xlu0 %101  ;;  %v107_v41 = vpop.permute.xlu1 %106 }
  0xab   :  { %v119_v42 = vmul.f32 %v205_v36, %v102_v40  ;;  %v123_v43 = vmul.f32 %v207_v37, %v102_v40  ;;  %v120_v44 = vmul.f32 %v209_v38, %v107_v41  ;;  %v124_v45 = vmul.f32 %v211_v39, %v107_v41 }
  0xad   :  { %v127_v51 = vadd.f32 %v120_v44, %v119_v42  ;;  %v136_v52 = vadd.f32 %v124_v45, %v123_v43 }
  0xae   :  { %v117_v48 = vpop.permute.xlu0 %116  ;;  %v112_v49 = vpop.permute.xlu1 %111 }
  0xaf   :  { %v121_v53 = vmul.f32 %v213_v46, %v112_v49  ;;  %v125_v54 = vmul.f32 %v215_v47, %v112_v49  ;;  %v122_v56 = vmul.f32 %v217_v50, %v117_v48  ;;  %v126_v57 = vmul.f32 %v219_v55, %v117_v48 }
  0xb1   :  { %v128_v58 = vadd.f32 %v127_v51, %v121_v53  ;;  %v137_v59 = vadd.f32 %v136_v52, %v125_v54 }
  0xb3   :  { %v129_v60 = vadd.f32 %v128_v58, %v122_v56  ;;  %v138_v61 = vadd.f32 %v137_v59, %v126_v57 }
  0xb5   :  { %v130_v63 = vrot.slane %v129_v60, 4  ;;  %v139_v1 = vrot.slane %v138_v61, 4 }
  0xb7   :  { %v131_v2 = vadd.f32 %v130_v63, %v129_v60  ;;  %v140_v3 = vadd.f32 %v139_v1, %v138_v61 }
  0xb9   :  { %v132_v4 = vrot.slane %v131_v2, 2  ;;  %v141_v5 = vrot.slane %v140_v3, 2 }
  0xbb   :  { %v133_v8 = vadd.f32 %v132_v4, %v131_v2  ;;  %v142_v9 = vadd.f32 %v141_v5, %v140_v3 }
  0xbd   :  { %v134_v10 = vrot.slane %v133_v8, 1  ;;  %v143_v11 = vrot.slane %v142_v9, 1 }
  0xbf   :  { %v135_v13 = vadd.f32 %v134_v10, %v133_v8  ;;  %v144_v14 = vadd.f32 %v143_v11, %v142_v9 }
  0xc1   :  { %v154_v16 = vmul.f32 %v150_v12, %v144_v14  ;;  %v153_v17 = vmul.f32 %v195_v7, %v135_v13 }
  0xc3   :  { %v162_v18 = vrot.slane %v154_v16, 7 }
  0xc5   :  { %v164_v19 = vsel %vm163_vm1, %v162_v18, %v153_v17 }
  0xc6   :  { %v166_v20 = vsel %vm157_vm2, %v164_v19, -1e+30 }
  0xc7   :  { %v168_v21 = vsel %vm167_vm3, %v166_v20, -inf }
  0xc8   :  { %169 = vmax.xlane.f32.xlu1 %v168_v21 }
 0x155   :  { %v170_v22 = vpop.xlane.xlu1 %169 }
 0x156   :  { %v171_v23 = vsub.f32 %v166_v20, %v170_v22 }
 0x158   :  { %v172_v24 = vmul.f32 1.442695, %v171_v23 }
 0x15a   :  { %220 = vpow2.f32 %v172_v24 }
 0x164   :  { %v221_v25 = vpop.eup %220 }
 0x165   :  { %v174_v26 = vsel %vm167_vm3, %v221_v25, 0.0 }
 0x166   :  { %175 = vadd.xlane.f32.xlu0 %v174_v26 }
 0x1f3   :  { %v176_v27 = vpop.xlane.xlu0 %175 }
 0x1f4   :  { %222 = vrcp.f32 %v176_v27 }
 0x1fe   :  { %v223_v0 = vpop.eup %222 }
 0x1ff   :  { %v178_v28 = vmul.f32 %v223_v0, %v221_v25 }
 0x201   :  { %179 = vst [vmem:[#allocation5] sm:$0x3] %v178_v28 }
 0x202   :  { %257 = shalt.err (!%p254_p12)
}
 0x203   :  { %s258_s16 = scalar_lea.hbm %s351_s4, 32 }
 0x204   :  { %p259_p13 = scmp.ne.s32.totalorder %s351_s4, %s258_s16  ;;  %p262_p0 = scmp.lt.u32.totalorder %s258_s16, %s351_s4 }
 0x206   :  { %p264_p1 = pnand %p262_p0, %p259_p13 }
 0x208   :  { %267 = shalt.err (!%p264_p1)
}
 0x209   :  { %189 = dma.vmem_to_hbm [thread:$0]  %s187_s12, 32, %s351_s4, [#allocation4]  }
 0x20a   :  { %270 = dma.done.wait [#allocation4], 32  }
 0x20b   :  { %271 = vsyncadd [#allocation4], 4294967264 }
 0x20c   :  { %193 = vsyncpa [#allocation3], 1 }
 0x20d   :  { %194 = vsyncpa [#allocation4], 1 }

</bundles_post_ra>
